<compile_context>
chip_gen: v7x
topology: tpu7x:2x2x1
jax: 0.10.0
libtpu: 0.0.40
codegen_flags: <defaults>
</compile_context>

<pallas_src>
import jax
import jax.numpy as jnp
from jax.experimental import pallas as pl
from jax.experimental.pallas import tpu as pltpu

EMBED_DIM = 32
HIDDEN_DIM = 32
POLARITIES = 3
VOCAB = 20


# ---------------------------------------------------------------------------
# Fused kernel: both unidirectional LSTMs interleaved along the lane axis,
# variable length handled by freezing the state once t >= length
# (replicates pack_padded_sequence semantics for the final hidden state).
# ---------------------------------------------------------------------------
def tc_lstm_fused_kernel(emb_ref, vt_ref, lens_ref, wtok_ref, wtgt_ref,
                         whh_ref, b_ref, dw_ref, db_ref, out_ref, gx_ref):
    T, Bp, H8 = gx_ref.shape            # (T, 8, 8H)
    H2 = lens_ref.shape[1]              # 2H  ( = [left H | right H] )
    H = H2 // 2

    whh = whh_ref[...]                  # (2H, 8H) block-diagonal over tasks
    lens = lens_ref[...]                # (Bp, 2H) int32 per-task lengths

    # Hoisted input projection (one MXU matmul for all timesteps of both
    # tasks) + time-invariant v_target/bias term, folded into gx once.
    base = (jnp.dot(vt_ref[...], wtgt_ref[...],
                    preferred_element_type=jnp.float32) + b_ref[...])   # (Bp, 8H)
    gx = jnp.dot(emb_ref[...], wtok_ref[...],
                 preferred_element_type=jnp.float32)                    # (T*Bp, 8H)
    gx_ref[...] = gx.reshape(T, Bp, H8) + base[None, :, :]

    # Gate/lane layout: [ i | f | o | g ], each slab 2H = [left | right].
    # Sigmoid-slab weights were pre-scaled by 0.5 in the wrapper, so one tanh
    # per step + an affine fix-up yields all four activations:
    #   sigmoid(x) = 0.5*tanh(x/2) + 0.5
    col = jax.lax.broadcasted_iota(jnp.int32, (1, H8), 1)
    is_sig = col < 6 * H
    post_scale = jnp.where(is_sig, 0.5, 1.0)
    post_bias = jnp.where(is_sig, 0.5, 0.0)

    h = jnp.zeros((Bp, H2), jnp.float32)        # [h_left | h_right]
    c = jnp.zeros((Bp, H2), jnp.float32)

    # Fully unrolled recurrence (T small & static) — only h @ Whh, one tanh
    # and a handful of full-vreg VALU ops remain on the serial critical path.
    for t in range(T):
        g = gx_ref[t] + jnp.dot(h, whh, preferred_element_type=jnp.float32)
        gates = jnp.tanh(g) * post_scale + post_bias        # (Bp, 8H)
        i_g = gates[:, 0:H2]
        f_g = gates[:, H2:2 * H2]
        o_g = gates[:, 2 * H2:3 * H2]
        g_g = gates[:, 3 * H2:4 * H2]
        c_new = f_g * c + i_g * g_g
        h_new = o_g * jnp.tanh(c_new)
        valid = lens > t                       # freeze past each seq length
        c = jnp.where(valid, c_new, c)
        h = jnp.where(valid, h_new, h)

    # h is already concat(h_left, h_right) by construction -> fused dense
    # head, lane-padded to 128 so the only store is one aligned (Bp,128) slab.
    out_ref[...] = (jnp.dot(h, dw_ref[...], preferred_element_type=jnp.float32)
                    + db_ref[...])


def run_tc_lstm_fused(emb, vt, lens, wtok, wtgt, whh, bias, dw, db,
                      T, Bp, E, H, P_pad):
    H2, H8 = 2 * H, 8 * H
    return pl.pallas_call(
        tc_lstm_fused_kernel,
        out_shape=jax.ShapeDtypeStruct((Bp, P_pad), jnp.float32),
        grid=(1,),
        in_specs=[
            pl.BlockSpec((T * Bp, 2 * E), lambda i: (0, 0)),   # emb  [tok_l|tok_r]
            pl.BlockSpec((Bp, E), lambda i: (0, 0)),           # v_target
            pl.BlockSpec((Bp, H2), lambda i: (0, 0)),          # lengths per column
            pl.BlockSpec((2 * E, H8), lambda i: (0, 0)),       # W_ih(token), blockdiag
            pl.BlockSpec((E, H8), lambda i: (0, 0)),           # W_ih(target), fused
            pl.BlockSpec((H2, H8), lambda i: (0, 0)),          # W_hh blockdiag
            pl.BlockSpec((1, H8), lambda i: (0, 0)),           # bias
            pl.BlockSpec((H2, P_pad), lambda i: (0, 0)),       # dense W (padded)
            pl.BlockSpec((1, P_pad), lambda i: (0, 0)),        # dense b (padded)
        ],
        out_specs=pl.BlockSpec((Bp, P_pad), lambda i: (0, 0)),
        scratch_shapes=[pltpu.VMEM((T, Bp, H8), jnp.float32)],  # hoisted gx
        compiler_params=pltpu.CompilerParams(
            dimension_semantics=("arbitrary",)),
    )(emb, vt, lens, wtok, wtgt, whh, bias, dw, db)


# ---------------------------------------------------------------------------
# Wrapper-side weight fusion: PyTorch gate order (i,f,g,o) -> lane layout
# [ i | f | o | g ] with each slab = [left | right]; sigmoid columns (i,f,o)
# pre-scaled by 0.5 so the kernel needs a single tanh per step.
# ---------------------------------------------------------------------------
def _split_gates(w, H):
    return w[..., 0:H], w[..., H:2 * H], w[..., 2 * H:3 * H], w[..., 3 * H:4 * H]


def _fused_cols(w_l, w_r, H):
    il, fl, gl, ol = _split_gates(w_l, H)
    ir, fr, gr, o_r = _split_gates(w_r, H)
    return jnp.concatenate([il, ir, fl, fr, ol, o_r, gl, gr], axis=-1)


def _blockdiag_cols(w_l, w_r, H):
    il, fl, gl, ol = _split_gates(w_l, H)
    ir, fr, gr, o_r = _split_gates(w_r, H)
    z = jnp.zeros_like(il)
    top = jnp.concatenate([il, z, fl, z, ol, z, gl, z], axis=-1)
    bot = jnp.concatenate([z, ir, z, fr, z, o_r, z, gr], axis=-1)
    return jnp.concatenate([top, bot], axis=0)


def _build_fused_weights(params, H):
    wtok_bd = _blockdiag_cols(params['wih_tok'][0], params['wih_tok'][1], H)
    wtgt_f = _fused_cols(params['wih_tgt'][0], params['wih_tgt'][1], H)
    whh_bd = _blockdiag_cols(params['whh'][0], params['whh'][1], H)
    b_f = _fused_cols(params['b'][0], params['b'][1], H)
    # sigmoid(x) = 0.5*tanh(x/2)+0.5: fold the x/2 into the i,f,o columns.
    scale = jnp.concatenate([jnp.full((1, 6 * H), 0.5, jnp.float32),
                             jnp.ones((1, 2 * H), jnp.float32)], axis=-1)
    return wtok_bd * scale, wtgt_f * scale, whh_bd * scale, b_f * scale


# ---------------------------------------------------------------------------
# Full forward (plain-JAX glue: embedding gather, lengths, v_target mean),
# jitted as one unit so the glue fuses around the single pallas_call.
# ---------------------------------------------------------------------------
@jax.jit
def tc_lstm_forward(x_l, x_r, target, embedding_matrix, params):
    B = x_l.shape[0]
    E = embedding_matrix.shape[1]
    H = params['whh'].shape[-1] // 4
    P = params['dense_w'].shape[1]

    x_l_len = jnp.sum(x_l != 0, axis=-1).astype(jnp.int32)      # (B,)
    x_r_len = jnp.sum(x_r != 0, axis=-1).astype(jnp.int32)
    target_len = jnp.sum(target != 0, axis=-1).astype(jnp.float32)

    # Transpose the (tiny) int ids so the gather lands time-major directly.
    emb_l = embedding_matrix[x_l.T]                              # (Tl, B, E)
    emb_r = embedding_matrix[x_r.T]                              # (Tr, B, E)
    emb_t = embedding_matrix[target]                             # (B, Tt, E)

    # v_target = sum over ALL target positions / #non-pad tokens (matches the
    # PyTorch forward exactly, incl. its 0/0 behaviour on all-pad targets).
    v_target = jnp.sum(emb_t, axis=1) / target_len[:, None]     # (B, E)

    # Common length + batch padded to the f32 sublane count (8): every
    # per-step tile becomes vreg aligned; frozen-state masking hides the pads.
    T = max(emb_l.shape[0], emb_r.shape[0])
    Bp = max(8, ((B + 7) // 8) * 8)
    emb_l = jnp.pad(emb_l, ((0, T - emb_l.shape[0]), (0, Bp - B), (0, 0)))
    emb_r = jnp.pad(emb_r, ((0, T - emb_r.shape[0]), (0, Bp - B), (0, 0)))
    emb_cat = jnp.concatenate([emb_l, emb_r], axis=-1).reshape(T * Bp, 2 * E)

    v_target_p = jnp.pad(v_target, ((0, Bp - B), (0, 0)))        # (Bp, E)
    lens_cat = jnp.concatenate(
        [jnp.broadcast_to(x_l_len[:, None], (B, H)),
         jnp.broadcast_to(x_r_len[:, None], (B, H))], axis=1)
    lens_cat = jnp.pad(lens_cat, ((0, Bp - B), (0, 0)))          # (Bp, 2H)

    wtok_bd, wtgt_f, whh_bd, b_f = _build_fused_weights(params, H)

    P_pad = 128                                                  # lane-dense store
    dw = jnp.pad(params['dense_w'], ((0, 0), (0, P_pad - P)))
    db = jnp.pad(params['dense_b'][None, :], ((0, 0), (0, P_pad - P)))

    out_pad = run_tc_lstm_fused(emb_cat, v_target_p, lens_cat,
                                wtok_bd, wtgt_f, whh_bd, b_f, dw, db,
                                T, Bp, E, H, P_pad)
    return out_pad[:B, :P]


# ---------------------------------------------------------------------------
# Pure-JAX reference (straightforward port of the PyTorch module) for a
# correctness check of the fused kernel.
# ---------------------------------------------------------------------------
def tc_lstm_reference(x_l, x_r, target, embedding_matrix, params):
    H = params['whh'].shape[-1] // 4

    def lstm_last_h(emb_seq, lens, v_target, wtok, wtgt, whh, b):
        B, T, _ = emb_seq.shape
        h = jnp.zeros((B, H), jnp.float32)
        c = jnp.zeros((B, H), jnp.float32)
        for t in range(T):
            g = emb_seq[:, t] @ wtok + v_target @ wtgt + h @ whh + b[0]
            i = jax.nn.sigmoid(g[:, 0:H])
            f = jax.nn.sigmoid(g[:, H:2 * H])
            gg = jnp.tanh(g[:, 2 * H:3 * H])
            o = jax.nn.sigmoid(g[:, 3 * H:4 * H])
            c_new = f * c + i * gg
            h_new = o * jnp.tanh(c_new)
            m = (lens > t)[:, None]
            c = jnp.where(m, c_new, c)
            h = jnp.where(m, h_new, h)
        return h

    x_l_len = jnp.sum(x_l != 0, axis=-1)
    x_r_len = jnp.sum(x_r != 0, axis=-1)
    target_len = jnp.sum(target != 0, axis=-1).astype(jnp.float32)
    emb_l = embedding_matrix[x_l]
    emb_r = embedding_matrix[x_r]
    v_target = jnp.sum(embedding_matrix[target], axis=1) / target_len[:, None]
    h_l = lstm_last_h(emb_l, x_l_len, v_target, params['wih_tok'][0],
                      params['wih_tgt'][0], params['whh'][0], params['b'][0])
    h_r = lstm_last_h(emb_r, x_r_len, v_target, params['wih_tok'][1],
                      params['wih_tgt'][1], params['whh'][1], params['b'][1])
    h_n = jnp.concatenate([h_l, h_r], axis=-1)
    return h_n @ params['dense_w'] + params['dense_b']


if __name__ == "__main__":
    B, T, Tt = 2, 8, 4
    E, H, P = EMBED_DIM, HIDDEN_DIM, POLARITIES

    key = jax.random.PRNGKey(0)
    keys = iter(jax.random.split(key, 12))

    embedding_matrix = jax.random.normal(next(keys), (VOCAB, E), jnp.float32) * 0.5

    s = 1.0 / (H ** 0.5)

    def u(shape):
        return jax.random.uniform(next(keys), shape, jnp.float32, -s, s)

    # W_ih of the PyTorch LSTM (4H, 2E) split along its input axis (token half,
    # v_target half) and transposed; gate order i,f,g,o. Stacked [left, right].
    params = {
        'wih_tok': u((2, E, 4 * H)),
        'wih_tgt': u((2, E, 4 * H)),
        'whh':     u((2, H, 4 * H)),
        'b':       u((2, 1, 4 * H)),          # combined b_ih + b_hh
        'dense_w': jax.random.normal(next(keys), (2 * H, P), jnp.float32) * 0.05,
        'dense_b': jax.random.normal(next(keys), (P,), jnp.float32) * 0.05,
    }

    # token-id inputs (0 = pad); every row has length >= 1
    x_l = jnp.array([[5, 7, 2, 9, 11, 3, 4, 6],
                     [8, 2, 9, 5, 0, 0, 0, 0]], dtype=jnp.int32)
    x_r = jnp.array([[6, 4, 3, 11, 9, 2, 7, 5],
                     [3, 7, 5, 0, 0, 0, 0, 0]], dtype=jnp.int32)
    target = jnp.array([[9, 11, 0, 0],
                        [9, 0, 0, 0]], dtype=jnp.int32)

    out = tc_lstm_forward(x_l, x_r, target, embedding_matrix, params)
    out = jax.block_until_ready(out)
    assert out.shape == (B, P), out.shape
    assert bool(jnp.all(jnp.isfinite(out)))

    ref = tc_lstm_reference(x_l, x_r, target, embedding_matrix, params)
    assert bool(jnp.allclose(out, ref, atol=1e-3, rtol=1e-3)), (out, ref)

    print("KERNEL_OK")
</pallas_src>

<mosaic_0001>
module attributes {stable_mosaic.version = 11 : i64} {
  func.func @tc_lstm_fused_kernel(%arg0: i32, %arg1: memref<64x64xf32, #tpu.memory_space<vmem>>, %arg2: memref<8x32xf32, #tpu.memory_space<vmem>>, %arg3: memref<8x64xi32, #tpu.memory_space<vmem>>, %arg4: memref<64x256xf32, #tpu.memory_space<vmem>>, %arg5: memref<32x256xf32, #tpu.memory_space<vmem>>, %arg6: memref<64x256xf32, #tpu.memory_space<vmem>>, %arg7: memref<1x256xf32, #tpu.memory_space<vmem>>, %arg8: memref<64x128xf32, #tpu.memory_space<vmem>>, %arg9: memref<1x128xf32, #tpu.memory_space<vmem>>, %arg10: memref<8x128xf32, #tpu.memory_space<vmem>>, %arg11: memref<8x8x256xf32, #tpu.memory_space<vmem>>) attributes {dimension_semantics = [#tpu.dimension_semantics<arbitrary>], iteration_bounds = array<i64: 1>, scalar_prefetch = 0 : i64, scratch_operands = 1 : i64, tpu.core_type = #tpu.core_type<tc>, window_params = [{pipeline_mode = #tpu.pipeline_mode<synchronous>, transform_indices = @transform_0, window_bounds = array<i64: 64, 64>}, {pipeline_mode = #tpu.pipeline_mode<synchronous>, transform_indices = @transform_1, window_bounds = array<i64: 8, 32>}, {pipeline_mode = #tpu.pipeline_mode<synchronous>, transform_indices = @transform_2, window_bounds = array<i64: 8, 64>}, {pipeline_mode = #tpu.pipeline_mode<synchronous>, transform_indices = @transform_3, window_bounds = array<i64: 64, 256>}, {pipeline_mode = #tpu.pipeline_mode<synchronous>, transform_indices = @transform_4, window_bounds = array<i64: 32, 256>}, {pipeline_mode = #tpu.pipeline_mode<synchronous>, transform_indices = @transform_5, window_bounds = array<i64: 64, 256>}, {pipeline_mode = #tpu.pipeline_mode<synchronous>, transform_indices = @transform_6, window_bounds = array<i64: 1, 256>}, {pipeline_mode = #tpu.pipeline_mode<synchronous>, transform_indices = @transform_7, window_bounds = array<i64: 64, 128>}, {pipeline_mode = #tpu.pipeline_mode<synchronous>, transform_indices = @transform_8, window_bounds = array<i64: 1, 128>}, {pipeline_mode = #tpu.pipeline_mode<synchronous>, transform_indices = @transform_9, window_bounds = array<i64: 8, 128>}]} {
    %c0 = arith.constant 0 : index
    %c0_0 = arith.constant 0 : index
    %0 = vector.load %arg6[%c0, %c0_0] : memref<64x256xf32, #tpu.memory_space<vmem>>, vector<64x256xf32>
    %c0_1 = arith.constant 0 : index
    %c0_2 = arith.constant 0 : index
    %1 = vector.load %arg3[%c0_1, %c0_2] : memref<8x64xi32, #tpu.memory_space<vmem>>, vector<8x64xi32>
    %c0_3 = arith.constant 0 : index
    %c0_4 = arith.constant 0 : index
    %2 = vector.load %arg2[%c0_3, %c0_4] : memref<8x32xf32, #tpu.memory_space<vmem>>, vector<8x32xf32>
    %c0_5 = arith.constant 0 : index
    %c0_6 = arith.constant 0 : index
    %3 = vector.load %arg5[%c0_5, %c0_6] : memref<32x256xf32, #tpu.memory_space<vmem>>, vector<32x256xf32>
    %cst = arith.constant dense<0.000000e+00> : vector<8x256xf32>
    %4 = tpu.matmul %2, %3, %cst {dimension_numbers = #tpu.dot_dimension_numbers<[1], [0], [0], [1], [0, 0, 1, 1], [], []>} : vector<8x32xf32>, vector<32x256xf32>, vector<8x256xf32> -> vector<8x256xf32>
    %c0_7 = arith.constant 0 : index
    %c0_8 = arith.constant 0 : index
    %5 = vector.load %arg7[%c0_7, %c0_8] : memref<1x256xf32, #tpu.memory_space<vmem>>, vector<1x256xf32>
    %6 = vector.broadcast %5 : vector<1x256xf32> to vector<8x256xf32>
    %7 = arith.addf %4, %6 : vector<8x256xf32>
    %c0_9 = arith.constant 0 : index
    %c0_10 = arith.constant 0 : index
    %8 = vector.load %arg1[%c0_9, %c0_10] : memref<64x64xf32, #tpu.memory_space<vmem>>, vector<64x64xf32>
    %c0_11 = arith.constant 0 : index
    %c0_12 = arith.constant 0 : index
    %9 = vector.load %arg4[%c0_11, %c0_12] : memref<64x256xf32, #tpu.memory_space<vmem>>, vector<64x256xf32>
    %cst_13 = arith.constant dense<0.000000e+00> : vector<64x256xf32>
    %10 = tpu.matmul %8, %9, %cst_13 {dimension_numbers = #tpu.dot_dimension_numbers<[1], [0], [0], [1], [0, 0, 1, 1], [], []>} : vector<64x64xf32>, vector<64x256xf32>, vector<64x256xf32> -> vector<64x256xf32>
    %11 = vector.shape_cast %10 : vector<64x256xf32> to vector<8x8x256xf32>
    %12 = vector.shape_cast %7 : vector<8x256xf32> to vector<1x8x256xf32>
    %13 = vector.broadcast %12 : vector<1x8x256xf32> to vector<8x8x256xf32>
    %14 = arith.addf %11, %13 : vector<8x8x256xf32>
    %c0_14 = arith.constant 0 : index
    %c0_15 = arith.constant 0 : index
    %c0_16 = arith.constant 0 : index
    %15 = vector.load %arg11[%c0_14, %c0_15, %c0_16] : memref<8x8x256xf32, #tpu.memory_space<vmem>>, vector<8x8x256xf32>
    tpu.vector_store %arg11[%c0_14, %c0_15, %c0_16], %14 {strides = array<i32>} : memref<8x8x256xf32, #tpu.memory_space<vmem>>, vector<8x8x256xf32>,
    %16 = tpu.iota {dimensions = array<i32: 1>} : vector<1x256xi32>
    %c192_i32 = arith.constant 192 : i32
    %17 = vector.broadcast %c192_i32 : i32 to vector<1x256xi32>
    %18 = arith.cmpi slt, %16, %17 : vector<1x256xi32>
    %cst_17 = arith.constant 5.000000e-01 : f32
    %cst_18 = arith.constant 1.000000e+00 : f32
    %19 = vector.broadcast %cst_17 : f32 to vector<1x256xf32>
    %20 = vector.broadcast %cst_18 : f32 to vector<1x256xf32>
    %21 = arith.select %18, %19, %20 : vector<1x256xi1>, vector<1x256xf32>
    %cst_19 = arith.constant 5.000000e-01 : f32
    %cst_20 = arith.constant 0.000000e+00 : f32
    %22 = vector.broadcast %cst_19 : f32 to vector<1x256xf32>
    %23 = vector.broadcast %cst_20 : f32 to vector<1x256xf32>
    %24 = arith.select %18, %22, %23 : vector<1x256xi1>, vector<1x256xf32>
    %cst_21 = arith.constant 0.000000e+00 : f32
    %25 = vector.broadcast %cst_21 : f32 to vector<8x64xf32>
    %cst_22 = arith.constant 0.000000e+00 : f32
    %26 = vector.broadcast %cst_22 : f32 to vector<8x64xf32>
    %c0_23 = arith.constant 0 : index
    %c0_24 = arith.constant 0 : index
    %c0_25 = arith.constant 0 : index
    %27 = vector.load %arg11[%c0_23, %c0_24, %c0_25] : memref<8x8x256xf32, #tpu.memory_space<vmem>>, vector<1x8x256xf32>
    %28 = vector.shape_cast %27 : vector<1x8x256xf32> to vector<8x256xf32>
    %cst_26 = arith.constant dense<0.000000e+00> : vector<8x256xf32>
    %29 = tpu.matmul %25, %0, %cst_26 {dimension_numbers = #tpu.dot_dimension_numbers<[1], [0], [0], [1], [0, 0, 1, 1], [], []>} : vector<8x64xf32>, vector<64x256xf32>, vector<8x256xf32> -> vector<8x256xf32>
    %30 = arith.addf %28, %29 : vector<8x256xf32>
    %31 = math.tanh %30 : vector<8x256xf32>
    %32 = vector.broadcast %21 : vector<1x256xf32> to vector<8x256xf32>
    %33 = arith.mulf %31, %32 : vector<8x256xf32>
    %34 = vector.broadcast %24 : vector<1x256xf32> to vector<8x256xf32>
    %35 = arith.addf %33, %34 : vector<8x256xf32>
    %36 = vector.extract_strided_slice %35 {offsets = [0, 0], sizes = [8, 64], strides = [1, 1]} : vector<8x256xf32> to vector<8x64xf32>
    %37 = vector.extract_strided_slice %35 {offsets = [0, 64], sizes = [8, 64], strides = [1, 1]} : vector<8x256xf32> to vector<8x64xf32>
    %38 = vector.extract_strided_slice %35 {offsets = [0, 128], sizes = [8, 64], strides = [1, 1]} : vector<8x256xf32> to vector<8x64xf32>
    %39 = vector.extract_strided_slice %35 {offsets = [0, 192], sizes = [8, 64], strides = [1, 1]} : vector<8x256xf32> to vector<8x64xf32>
    %40 = arith.mulf %37, %26 : vector<8x64xf32>
    %41 = arith.mulf %36, %39 : vector<8x64xf32>
    %42 = arith.addf %40, %41 : vector<8x64xf32>
    %43 = math.tanh %42 : vector<8x64xf32>
    %44 = arith.mulf %38, %43 : vector<8x64xf32>
    %c0_i32 = arith.constant 0 : i32
    %45 = vector.broadcast %c0_i32 : i32 to vector<8x64xi32>
    %46 = arith.cmpi sgt, %1, %45 : vector<8x64xi32>
    %47 = arith.select %46, %42, %26 : vector<8x64xi1>, vector<8x64xf32>
    %48 = arith.select %46, %44, %25 : vector<8x64xi1>, vector<8x64xf32>
    %c1 = arith.constant 1 : index
    %c0_27 = arith.constant 0 : index
    %c0_28 = arith.constant 0 : index
    %49 = vector.load %arg11[%c1, %c0_27, %c0_28] : memref<8x8x256xf32, #tpu.memory_space<vmem>>, vector<1x8x256xf32>
    %50 = vector.shape_cast %49 : vector<1x8x256xf32> to vector<8x256xf32>
    %cst_29 = arith.constant dense<0.000000e+00> : vector<8x256xf32>
    %51 = tpu.matmul %48, %0, %cst_29 {dimension_numbers = #tpu.dot_dimension_numbers<[1], [0], [0], [1], [0, 0, 1, 1], [], []>} : vector<8x64xf32>, vector<64x256xf32>, vector<8x256xf32> -> vector<8x256xf32>
    %52 = arith.addf %50, %51 : vector<8x256xf32>
    %53 = math.tanh %52 : vector<8x256xf32>
    %54 = vector.broadcast %21 : vector<1x256xf32> to vector<8x256xf32>
    %55 = arith.mulf %53, %54 : vector<8x256xf32>
    %56 = vector.broadcast %24 : vector<1x256xf32> to vector<8x256xf32>
    %57 = arith.addf %55, %56 : vector<8x256xf32>
    %58 = vector.extract_strided_slice %57 {offsets = [0, 0], sizes = [8, 64], strides = [1, 1]} : vector<8x256xf32> to vector<8x64xf32>
    %59 = vector.extract_strided_slice %57 {offsets = [0, 64], sizes = [8, 64], strides = [1, 1]} : vector<8x256xf32> to vector<8x64xf32>
    %60 = vector.extract_strided_slice %57 {offsets = [0, 128], sizes = [8, 64], strides = [1, 1]} : vector<8x256xf32> to vector<8x64xf32>
    %61 = vector.extract_strided_slice %57 {offsets = [0, 192], sizes = [8, 64], strides = [1, 1]} : vector<8x256xf32> to vector<8x64xf32>
    %62 = arith.mulf %59, %47 : vector<8x64xf32>
    %63 = arith.mulf %58, %61 : vector<8x64xf32>
    %64 = arith.addf %62, %63 : vector<8x64xf32>
    %65 = math.tanh %64 : vector<8x64xf32>
    %66 = arith.mulf %60, %65 : vector<8x64xf32>
    %c1_i32 = arith.constant 1 : i32
    %67 = vector.broadcast %c1_i32 : i32 to vector<8x64xi32>
    %68 = arith.cmpi sgt, %1, %67 : vector<8x64xi32>
    %69 = arith.select %68, %64, %47 : vector<8x64xi1>, vector<8x64xf32>
    %70 = arith.select %68, %66, %48 : vector<8x64xi1>, vector<8x64xf32>
    %c2 = arith.constant 2 : index
    %c0_30 = arith.constant 0 : index
    %c0_31 = arith.constant 0 : index
    %71 = vector.load %arg11[%c2, %c0_30, %c0_31] : memref<8x8x256xf32, #tpu.memory_space<vmem>>, vector<1x8x256xf32>
    %72 = vector.shape_cast %71 : vector<1x8x256xf32> to vector<8x256xf32>
    %cst_32 = arith.constant dense<0.000000e+00> : vector<8x256xf32>
    %73 = tpu.matmul %70, %0, %cst_32 {dimension_numbers = #tpu.dot_dimension_numbers<[1], [0], [0], [1], [0, 0, 1, 1], [], []>} : vector<8x64xf32>, vector<64x256xf32>, vector<8x256xf32> -> vector<8x256xf32>
    %74 = arith.addf %72, %73 : vector<8x256xf32>
    %75 = math.tanh %74 : vector<8x256xf32>
    %76 = vector.broadcast %21 : vector<1x256xf32> to vector<8x256xf32>
    %77 = arith.mulf %75, %76 : vector<8x256xf32>
    %78 = vector.broadcast %24 : vector<1x256xf32> to vector<8x256xf32>
    %79 = arith.addf %77, %78 : vector<8x256xf32>
    %80 = vector.extract_strided_slice %79 {offsets = [0, 0], sizes = [8, 64], strides = [1, 1]} : vector<8x256xf32> to vector<8x64xf32>
    %81 = vector.extract_strided_slice %79 {offsets = [0, 64], sizes = [8, 64], strides = [1, 1]} : vector<8x256xf32> to vector<8x64xf32>
    %82 = vector.extract_strided_slice %79 {offsets = [0, 128], sizes = [8, 64], strides = [1, 1]} : vector<8x256xf32> to vector<8x64xf32>
    %83 = vector.extract_strided_slice %79 {offsets = [0, 192], sizes = [8, 64], strides = [1, 1]} : vector<8x256xf32> to vector<8x64xf32>
    %84 = arith.mulf %81, %69 : vector<8x64xf32>
    %85 = arith.mulf %80, %83 : vector<8x64xf32>
    %86 = arith.addf %84, %85 : vector<8x64xf32>
    %87 = math.tanh %86 : vector<8x64xf32>
    %88 = arith.mulf %82, %87 : vector<8x64xf32>
    %c2_i32 = arith.constant 2 : i32
    %89 = vector.broadcast %c2_i32 : i32 to vector<8x64xi32>
    %90 = arith.cmpi sgt, %1, %89 : vector<8x64xi32>
    %91 = arith.select %90, %86, %69 : vector<8x64xi1>, vector<8x64xf32>
    %92 = arith.select %90, %88, %70 : vector<8x64xi1>, vector<8x64xf32>
    %c3 = arith.constant 3 : index
    %c0_33 = arith.constant 0 : index
    %c0_34 = arith.constant 0 : index
    %93 = vector.load %arg11[%c3, %c0_33, %c0_34] : memref<8x8x256xf32, #tpu.memory_space<vmem>>, vector<1x8x256xf32>
    %94 = vector.shape_cast %93 : vector<1x8x256xf32> to vector<8x256xf32>
    %cst_35 = arith.constant dense<0.000000e+00> : vector<8x256xf32>
    %95 = tpu.matmul %92, %0, %cst_35 {dimension_numbers = #tpu.dot_dimension_numbers<[1], [0], [0], [1], [0, 0, 1, 1], [], []>} : vector<8x64xf32>, vector<64x256xf32>, vector<8x256xf32> -> vector<8x256xf32>
    %96 = arith.addf %94, %95 : vector<8x256xf32>
    %97 = math.tanh %96 : vector<8x256xf32>
    %98 = vector.broadcast %21 : vector<1x256xf32> to vector<8x256xf32>
    %99 = arith.mulf %97, %98 : vector<8x256xf32>
    %100 = vector.broadcast %24 : vector<1x256xf32> to vector<8x256xf32>
    %101 = arith.addf %99, %100 : vector<8x256xf32>
    %102 = vector.extract_strided_slice %101 {offsets = [0, 0], sizes = [8, 64], strides = [1, 1]} : vector<8x256xf32> to vector<8x64xf32>
    %103 = vector.extract_strided_slice %101 {offsets = [0, 64], sizes = [8, 64], strides = [1, 1]} : vector<8x256xf32> to vector<8x64xf32>
    %104 = vector.extract_strided_slice %101 {offsets = [0, 128], sizes = [8, 64], strides = [1, 1]} : vector<8x256xf32> to vector<8x64xf32>
    %105 = vector.extract_strided_slice %101 {offsets = [0, 192], sizes = [8, 64], strides = [1, 1]} : vector<8x256xf32> to vector<8x64xf32>
    %106 = arith.mulf %103, %91 : vector<8x64xf32>
    %107 = arith.mulf %102, %105 : vector<8x64xf32>
    %108 = arith.addf %106, %107 : vector<8x64xf32>
    %109 = math.tanh %108 : vector<8x64xf32>
    %110 = arith.mulf %104, %109 : vector<8x64xf32>
    %c3_i32 = arith.constant 3 : i32
    %111 = vector.broadcast %c3_i32 : i32 to vector<8x64xi32>
    %112 = arith.cmpi sgt, %1, %111 : vector<8x64xi32>
    %113 = arith.select %112, %108, %91 : vector<8x64xi1>, vector<8x64xf32>
    %114 = arith.select %112, %110, %92 : vector<8x64xi1>, vector<8x64xf32>
    %c4 = arith.constant 4 : index
    %c0_36 = arith.constant 0 : index
    %c0_37 = arith.constant 0 : index
    %115 = vector.load %arg11[%c4, %c0_36, %c0_37] : memref<8x8x256xf32, #tpu.memory_space<vmem>>, vector<1x8x256xf32>
    %116 = vector.shape_cast %115 : vector<1x8x256xf32> to vector<8x256xf32>
    %cst_38 = arith.constant dense<0.000000e+00> : vector<8x256xf32>
    %117 = tpu.matmul %114, %0, %cst_38 {dimension_numbers = #tpu.dot_dimension_numbers<[1], [0], [0], [1], [0, 0, 1, 1], [], []>} : vector<8x64xf32>, vector<64x256xf32>, vector<8x256xf32> -> vector<8x256xf32>
    %118 = arith.addf %116, %117 : vector<8x256xf32>
    %119 = math.tanh %118 : vector<8x256xf32>
    %120 = vector.broadcast %21 : vector<1x256xf32> to vector<8x256xf32>
    %121 = arith.mulf %119, %120 : vector<8x256xf32>
    %122 = vector.broadcast %24 : vector<1x256xf32> to vector<8x256xf32>
    %123 = arith.addf %121, %122 : vector<8x256xf32>
    %124 = vector.extract_strided_slice %123 {offsets = [0, 0], sizes = [8, 64], strides = [1, 1]} : vector<8x256xf32> to vector<8x64xf32>
    %125 = vector.extract_strided_slice %123 {offsets = [0, 64], sizes = [8, 64], strides = [1, 1]} : vector<8x256xf32> to vector<8x64xf32>
    %126 = vector.extract_strided_slice %123 {offsets = [0, 128], sizes = [8, 64], strides = [1, 1]} : vector<8x256xf32> to vector<8x64xf32>
    %127 = vector.extract_strided_slice %123 {offsets = [0, 192], sizes = [8, 64], strides = [1, 1]} : vector<8x256xf32> to vector<8x64xf32>
    %128 = arith.mulf %125, %113 : vector<8x64xf32>
    %129 = arith.mulf %124, %127 : vector<8x64xf32>
    %130 = arith.addf %128, %129 : vector<8x64xf32>
    %131 = math.tanh %130 : vector<8x64xf32>
    %132 = arith.mulf %126, %131 : vector<8x64xf32>
    %c4_i32 = arith.constant 4 : i32
    %133 = vector.broadcast %c4_i32 : i32 to vector<8x64xi32>
    %134 = arith.cmpi sgt, %1, %133 : vector<8x64xi32>
    %135 = arith.select %134, %130, %113 : vector<8x64xi1>, vector<8x64xf32>
    %136 = arith.select %134, %132, %114 : vector<8x64xi1>, vector<8x64xf32>
    %c5 = arith.constant 5 : index
    %c0_39 = arith.constant 0 : index
    %c0_40 = arith.constant 0 : index
    %137 = vector.load %arg11[%c5, %c0_39, %c0_40] : memref<8x8x256xf32, #tpu.memory_space<vmem>>, vector<1x8x256xf32>
    %138 = vector.shape_cast %137 : vector<1x8x256xf32> to vector<8x256xf32>
    %cst_41 = arith.constant dense<0.000000e+00> : vector<8x256xf32>
    %139 = tpu.matmul %136, %0, %cst_41 {dimension_numbers = #tpu.dot_dimension_numbers<[1], [0], [0], [1], [0, 0, 1, 1], [], []>} : vector<8x64xf32>, vector<64x256xf32>, vector<8x256xf32> -> vector<8x256xf32>
    %140 = arith.addf %138, %139 : vector<8x256xf32>
    %141 = math.tanh %140 : vector<8x256xf32>
    %142 = vector.broadcast %21 : vector<1x256xf32> to vector<8x256xf32>
    %143 = arith.mulf %141, %142 : vector<8x256xf32>
    %144 = vector.broadcast %24 : vector<1x256xf32> to vector<8x256xf32>
    %145 = arith.addf %143, %144 : vector<8x256xf32>
    %146 = vector.extract_strided_slice %145 {offsets = [0, 0], sizes = [8, 64], strides = [1, 1]} : vector<8x256xf32> to vector<8x64xf32>
    %147 = vector.extract_strided_slice %145 {offsets = [0, 64], sizes = [8, 64], strides = [1, 1]} : vector<8x256xf32> to vector<8x64xf32>
    %148 = vector.extract_strided_slice %145 {offsets = [0, 128], sizes = [8, 64], strides = [1, 1]} : vector<8x256xf32> to vector<8x64xf32>
    %149 = vector.extract_strided_slice %145 {offsets = [0, 192], sizes = [8, 64], strides = [1, 1]} : vector<8x256xf32> to vector<8x64xf32>
    %150 = arith.mulf %147, %135 : vector<8x64xf32>
    %151 = arith.mulf %146, %149 : vector<8x64xf32>
    %152 = arith.addf %150, %151 : vector<8x64xf32>
    %153 = math.tanh %152 : vector<8x64xf32>
    %154 = arith.mulf %148, %153 : vector<8x64xf32>
    %c5_i32 = arith.constant 5 : i32
    %155 = vector.broadcast %c5_i32 : i32 to vector<8x64xi32>
    %156 = arith.cmpi sgt, %1, %155 : vector<8x64xi32>
    %157 = arith.select %156, %152, %135 : vector<8x64xi1>, vector<8x64xf32>
    %158 = arith.select %156, %154, %136 : vector<8x64xi1>, vector<8x64xf32>
    %c6 = arith.constant 6 : index
    %c0_42 = arith.constant 0 : index
    %c0_43 = arith.constant 0 : index
    %159 = vector.load %arg11[%c6, %c0_42, %c0_43] : memref<8x8x256xf32, #tpu.memory_space<vmem>>, vector<1x8x256xf32>
    %160 = vector.shape_cast %159 : vector<1x8x256xf32> to vector<8x256xf32>
    %cst_44 = arith.constant dense<0.000000e+00> : vector<8x256xf32>
    %161 = tpu.matmul %158, %0, %cst_44 {dimension_numbers = #tpu.dot_dimension_numbers<[1], [0], [0], [1], [0, 0, 1, 1], [], []>} : vector<8x64xf32>, vector<64x256xf32>, vector<8x256xf32> -> vector<8x256xf32>
    %162 = arith.addf %160, %161 : vector<8x256xf32>
    %163 = math.tanh %162 : vector<8x256xf32>
    %164 = vector.broadcast %21 : vector<1x256xf32> to vector<8x256xf32>
    %165 = arith.mulf %163, %164 : vector<8x256xf32>
    %166 = vector.broadcast %24 : vector<1x256xf32> to vector<8x256xf32>
    %167 = arith.addf %165, %166 : vector<8x256xf32>
    %168 = vector.extract_strided_slice %167 {offsets = [0, 0], sizes = [8, 64], strides = [1, 1]} : vector<8x256xf32> to vector<8x64xf32>
    %169 = vector.extract_strided_slice %167 {offsets = [0, 64], sizes = [8, 64], strides = [1, 1]} : vector<8x256xf32> to vector<8x64xf32>
    %170 = vector.extract_strided_slice %167 {offsets = [0, 128], sizes = [8, 64], strides = [1, 1]} : vector<8x256xf32> to vector<8x64xf32>
    %171 = vector.extract_strided_slice %167 {offsets = [0, 192], sizes = [8, 64], strides = [1, 1]} : vector<8x256xf32> to vector<8x64xf32>
    %172 = arith.mulf %169, %157 : vector<8x64xf32>
    %173 = arith.mulf %168, %171 : vector<8x64xf32>
    %174 = arith.addf %172, %173 : vector<8x64xf32>
    %175 = math.tanh %174 : vector<8x64xf32>
    %176 = arith.mulf %170, %175 : vector<8x64xf32>
    %c6_i32 = arith.constant 6 : i32
    %177 = vector.broadcast %c6_i32 : i32 to vector<8x64xi32>
    %178 = arith.cmpi sgt, %1, %177 : vector<8x64xi32>
    %179 = arith.select %178, %174, %157 : vector<8x64xi1>, vector<8x64xf32>
    %180 = arith.select %178, %176, %158 : vector<8x64xi1>, vector<8x64xf32>
    %c7 = arith.constant 7 : index
    %c0_45 = arith.constant 0 : index
    %c0_46 = arith.constant 0 : index
    %181 = vector.load %arg11[%c7, %c0_45, %c0_46] : memref<8x8x256xf32, #tpu.memory_space<vmem>>, vector<1x8x256xf32>
    %182 = vector.shape_cast %181 : vector<1x8x256xf32> to vector<8x256xf32>
    %cst_47 = arith.constant dense<0.000000e+00> : vector<8x256xf32>
    %183 = tpu.matmul %180, %0, %cst_47 {dimension_numbers = #tpu.dot_dimension_numbers<[1], [0], [0], [1], [0, 0, 1, 1], [], []>} : vector<8x64xf32>, vector<64x256xf32>, vector<8x256xf32> -> vector<8x256xf32>
    %184 = arith.addf %182, %183 : vector<8x256xf32>
    %185 = math.tanh %184 : vector<8x256xf32>
    %186 = vector.broadcast %21 : vector<1x256xf32> to vector<8x256xf32>
    %187 = arith.mulf %185, %186 : vector<8x256xf32>
    %188 = vector.broadcast %24 : vector<1x256xf32> to vector<8x256xf32>
    %189 = arith.addf %187, %188 : vector<8x256xf32>
    %190 = vector.extract_strided_slice %189 {offsets = [0, 0], sizes = [8, 64], strides = [1, 1]} : vector<8x256xf32> to vector<8x64xf32>
    %191 = vector.extract_strided_slice %189 {offsets = [0, 64], sizes = [8, 64], strides = [1, 1]} : vector<8x256xf32> to vector<8x64xf32>
    %192 = vector.extract_strided_slice %189 {offsets = [0, 128], sizes = [8, 64], strides = [1, 1]} : vector<8x256xf32> to vector<8x64xf32>
    %193 = vector.extract_strided_slice %189 {offsets = [0, 192], sizes = [8, 64], strides = [1, 1]} : vector<8x256xf32> to vector<8x64xf32>
    %194 = arith.mulf %191, %179 : vector<8x64xf32>
    %195 = arith.mulf %190, %193 : vector<8x64xf32>
    %196 = arith.addf %194, %195 : vector<8x64xf32>
    %197 = math.tanh %196 : vector<8x64xf32>
    %198 = arith.mulf %192, %197 : vector<8x64xf32>
    %c7_i32 = arith.constant 7 : i32
    %199 = vector.broadcast %c7_i32 : i32 to vector<8x64xi32>
    %200 = arith.cmpi sgt, %1, %199 : vector<8x64xi32>
    %201 = arith.select %200, %198, %180 : vector<8x64xi1>, vector<8x64xf32>
    %c0_48 = arith.constant 0 : index
    %c0_49 = arith.constant 0 : index
    %202 = vector.load %arg8[%c0_48, %c0_49] : memref<64x128xf32, #tpu.memory_space<vmem>>, vector<64x128xf32>
    %cst_50 = arith.constant dense<0.000000e+00> : vector<8x128xf32>
    %203 = tpu.matmul %201, %202, %cst_50 {dimension_numbers = #tpu.dot_dimension_numbers<[1], [0], [0], [1], [0, 0, 1, 1], [], []>} : vector<8x64xf32>, vector<64x128xf32>, vector<8x128xf32> -> vector<8x128xf32>
    %c0_51 = arith.constant 0 : index
    %c0_52 = arith.constant 0 : index
    %204 = vector.load %arg9[%c0_51, %c0_52] : memref<1x128xf32, #tpu.memory_space<vmem>>, vector<1x128xf32>
    %205 = vector.broadcast %204 : vector<1x128xf32> to vector<8x128xf32>
    %206 = arith.addf %203, %205 : vector<8x128xf32>
    %c0_53 = arith.constant 0 : index
    %c0_54 = arith.constant 0 : index
    %207 = vector.load %arg10[%c0_53, %c0_54] : memref<8x128xf32, #tpu.memory_space<vmem>>, vector<8x128xf32>
    tpu.vector_store %arg10[%c0_53, %c0_54], %206 {strides = array<i32>} : memref<8x128xf32, #tpu.memory_space<vmem>>, vector<8x128xf32>,
    return
  }
  func.func @transform_0(%arg0: i32) -> (i32, i32) {
    %c0_i32 = arith.constant 0 : i32
    %c0_i32_0 = arith.constant 0 : i32
    %c0_i32_1 = arith.constant 0 : i32
    return %c0_i32, %c0_i32_0 : i32, i32
  }
  func.func @transform_1(%arg0: i32) -> (i32, i32) {
    %c0_i32 = arith.constant 0 : i32
    %c0_i32_0 = arith.constant 0 : i32
    %c0_i32_1 = arith.constant 0 : i32
    return %c0_i32, %c0_i32_0 : i32, i32
  }
  func.func @transform_2(%arg0: i32) -> (i32, i32) {
    %c0_i32 = arith.constant 0 : i32
    %c0_i32_0 = arith.constant 0 : i32
    %c0_i32_1 = arith.constant 0 : i32
    return %c0_i32, %c0_i32_0 : i32, i32
  }
  func.func @transform_3(%arg0: i32) -> (i32, i32) {
    %c0_i32 = arith.constant 0 : i32
    %c0_i32_0 = arith.constant 0 : i32
    %c0_i32_1 = arith.constant 0 : i32
    return %c0_i32, %c0_i32_0 : i32, i32
  }
  func.func @transform_4(%arg0: i32) -> (i32, i32) {
    %c0_i32 = arith.constant 0 : i32
    %c0_i32_0 = arith.constant 0 : i32
    %c0_i32_1 = arith.constant 0 : i32
    return %c0_i32, %c0_i32_0 : i32, i32
  }
  func.func @transform_5(%arg0: i32) -> (i32, i32) {
    %c0_i32 = arith.constant 0 : i32
    %c0_i32_0 = arith.constant 0 : i32
    %c0_i32_1 = arith.constant 0 : i32
    return %c0_i32, %c0_i32_0 : i32, i32
  }
  func.func @transform_6(%arg0: i32) -> (i32, i32) {
    %c0_i32 = arith.constant 0 : i32
    %c0_i32_0 = arith.constant 0 : i32
    %c0_i32_1 = arith.constant 0 : i32
    return %c0_i32, %c0_i32_0 : i32, i32
  }
  func.func @transform_7(%arg0: i32) -> (i32, i32) {
    %c0_i32 = arith.constant 0 : i32
    %c0_i32_0 = arith.constant 0 : i32
    %c0_i32_1 = arith.constant 0 : i32
    return %c0_i32, %c0_i32_0 : i32, i32
  }
  func.func @transform_8(%arg0: i32) -> (i32, i32) {
    %c0_i32 = arith.constant 0 : i32
    %c0_i32_0 = arith.constant 0 : i32
    %c0_i32_1 = arith.constant 0 : i32
    return %c0_i32, %c0_i32_0 : i32, i32
  }
  func.func @transform_9(%arg0: i32) -> (i32, i32) {
    %c0_i32 = arith.constant 0 : i32
    %c0_i32_0 = arith.constant 0 : i32
    %c0_i32_1 = arith.constant 0 : i32
    return %c0_i32, %c0_i32_0 : i32, i32
  }
}

</mosaic_0001>

<bundles_post_ra>
// kernel: mul.7
= control target key start
LH: loop header
LB: loop body
LE: loop exit
PB: predicated region body
PF: predicated region fallthrough
CT: control target
= control target key end

     0   :  { %s56_s0 = inlined_call_operand.vmem [shape: f32[1,256], index: 0, kind: input, shape index: {}]   ;;  %s57_s1 = inlined_call_operand.vmem [shape: f32[1,256], index: 1, kind: input, shape index: {}]   ;;  %s58_s2 = inlined_call_operand.vmem [shape: f32[1,256], index: 2, kind: output, shape index: {}]  }
   0x1   :  { %v3_v0 = vld [vmem:[%s56_s0] sm:$0x1]  ;;  %v20_v2 = vld [vmem:[%s56_s0 + $0x1] sm:$0x1] }
   0x2   :  { %v4_v1 = vld [vmem:[%s57_s1] sm:$0x1]  ;;  %v21_v4 = vld [vmem:[%s57_s1 + $0x1] sm:$0x1] }
   0x3   :  { %v7_v3 = vmul.f32 %v4_v1, %v3_v0  ;;  %v16_v5 = vmul.f32 %v21_v4, %v20_v2 }
   0x5   :  { %9 = vst [vmem:[%s58_s2] sm:$0x1] %v7_v3  ;;  %22 = vst [vmem:[%s58_s2 + $0x1] sm:$0x1] %v16_v5 }

// kernel: tc_lstm_forward.1
= control target key start
LH: loop header
LB: loop body
LE: loop exit
PB: predicated region body
PF: predicated region fallthrough
CT: control target
= control target key end

     0   :  { %v1630_v3 = vmov 0.0   ;;  %vm70_vm0 = vcmask 261120   ;;  %vm169_vm1 = vcmask 523264   ;;  %vm1634_vm10 = vmmov 0   ;;  %s2108_s4 = inlined_call_operand.vmem [shape: f32[32,256], index: 4, kind: input, shape index: {}]   ;;  %s2109_s3 = inlined_call_operand.vmem [shape: f32[64,256], index: 3, kind: input, shape index: {}]   ;;  %s2110_s1 = inlined_call_operand.vmem [shape: f32[8,32], index: 1, kind: input, shape index: {}]   ;;  %s2111_s5 = inlined_call_operand.vmem [shape: f32[64,256], index: 5, kind: input, shape index: {}]   ;;  %s2112_s0 = inlined_call_operand.vmem [shape: f32[64,64], index: 0, kind: input, shape index: {}]   ;;  %s2113_s6 = inlined_call_operand.vmem [shape: f32[1,256], index: 6, kind: input, shape index: {}]   ;;  %s2114_s2 = inlined_call_operand.vmem [shape: s32[8,64], index: 2, kind: input, shape index: {}]   ;;  %s2115_s7 = inlined_call_operand.vmem [shape: f32[64,128], index: 7, kind: input, shape index: {}]   ;;  %s2116_s8 = inlined_call_operand.vmem [shape: f32[1,128], index: 8, kind: input, shape index: {}]   ;;  %s2117_s9 = inlined_call_operand.vmem [shape: f32[8,128], index: 9, kind: output, shape index: {}]  }
   0x1   :  { %v51_v0 = vld [vmem:[%s2108_s4 + $0x8] sm:$0xff]  ;;  %v53_v1 = vld [vmem:[%s2108_s4 + $0x18] sm:$0xff]  ;;  %v50_v2 = vld [vmem:[%s2108_s4] sm:$0xff]  ;;  %138 = vmatprep.mubr.f32.mxu0 %v1630_v3  ;;  %639 = vmatprep.mubr.f32.mxu1 %v1630_v3 }
   0x2   :  { %v1381_v4 = vpack.c.bf16 %v53_v1, %v51_v0  ;;  %v52_v5 = vld [vmem:[%s2108_s4 + $0x10] sm:$0xff]  ;;  %v55_v6 = vld [vmem:[%s2108_s4 + $0x28] sm:$0xff]  ;;  %v57_v7 = vld [vmem:[%s2108_s4 + $0x38] sm:$0xff] }
   0x3   :  { %v1383_v8 = vpack.c.bf16 %v52_v5, %v50_v2  ;;  %v1385_v9 = vpack.c.bf16 %v57_v7, %v55_v6  ;;  %v54_v10 = vld [vmem:[%s2108_s4 + $0x20] sm:$0xff]  ;;  %v56_v11 = vld [vmem:[%s2108_s4 + $0x30] sm:$0xff]  ;;  %v154_v12 = vld [vmem:[%s2109_s3 + $0x8] sm:$0xff] }
   0x4   :  { %1382 = vmatprep.subr.bf16.mxu0 %v1381_v4  ;;  %v156_v13 = vld [vmem:[%s2109_s3 + $0x18] sm:$0xff]  ;;  %v1387_v14 = vpack.c.bf16 %v56_v11, %v54_v10  ;;  %v153_v16 = vld [vmem:[%s2109_s3] sm:$0xff]  ;;  %v155_v17 = vld [vmem:[%s2109_s3 + $0x10] sm:$0xff] }
   0x5   :  { %1384 = vmatpush1.bf16.msra.mxu0 %v1383_v8  ;;  %v1389_v15 = vpack.c.bf16 %v156_v13, %v154_v12  ;;  %v158_v18 = vld [vmem:[%s2109_s3 + $0x28] sm:$0xff]  ;;  %v160_v19 = vld [vmem:[%s2109_s3 + $0x38] sm:$0xff]  ;;  %v49_v20 = vld [vmem:[%s2110_s1] sm:$0xff]  ;;  %v1391_v21 = vpack.c.bf16 %v155_v17, %v153_v16  ;;  %v60_v13 = vlaneseq }
   0x6   :  { %1386 = vmatprep.subr.bf16.mxu0 %v1385_v9  ;;  %v157_v22 = vld [vmem:[%s2109_s3 + $0x20] sm:$0xff]  ;;  %v159_v23 = vld [vmem:[%s2109_s3 + $0x30] sm:$0xff]  ;;  %v33_v24 = vld [vmem:[%s2111_s5 + $0x8] sm:$0xff]  ;;  %v1393_v25 = vpack.c.bf16 %v160_v19, %v158_v18 }
   0x7   :  { %v35_v26 = vld [vmem:[%s2111_s5 + $0x18] sm:$0xff]  ;;  %v32_v27 = vld [vmem:[%s2111_s5] sm:$0xff]  ;;  %v34_v28 = vld [vmem:[%s2111_s5 + $0x10] sm:$0xff]  ;;  %v1395_v34 = vpack.c.bf16 %v159_v23, %v157_v22  ;;  %v61_v16 = vshrl.u32 %v60_v13, 7 }
   0x8   :  { %v162_v29 = vld [vmem:[%s2109_s3 + $0x48] sm:$0xff]  ;;  %v164_v30 = vld [vmem:[%s2109_s3 + $0x58] sm:$0xff]  ;;  %v1759_v32 = vpack.c.bf16 %v35_v26, %v33_v24  ;;  %v161_v35 = vld [vmem:[%s2109_s3 + $0x40] sm:$0xff]  ;;  %v1771_v37 = vpack.c.bf16 %v34_v28, %v32_v27  ;;  %v340_v28 = vand.u32 127, %v60_v13 }
   0x9   :  { %1388 = vmatpush1.bf16.msra.mxu0 %v1387_v14  ;;  %v37_v31 = vld [vmem:[%s2111_s5 + $0x28] sm:$0xff]  ;;  %v39_v33 = vld [vmem:[%s2111_s5 + $0x38] sm:$0xff]  ;;  %v163_v36 = vld [vmem:[%s2109_s3 + $0x50] sm:$0xff]  ;;  %v1397_v38 = vpack.c.bf16 %v164_v30, %v162_v29  ;;  %v66_v19 = vsub.s32 1, %v61_v16 }
   0xa   :  { %1390 = vmatprep.subr.bf16.mxu0 %v1389_v15  ;;  %v166_v39 = vld [vmem:[%s2109_s3 + $0x68] sm:$0xff]  ;;  %v1776_v40 = vpack.c.bf16 %v39_v33, %v37_v31  ;;  %v36_v41 = vld [vmem:[%s2111_s5 + $0x20] sm:$0xff]  ;;  %v38_v42 = vld [vmem:[%s2111_s5 + $0x30] sm:$0xff]  ;;  %1438 = vmatprep.subr.bf16.mxu1 %v1759_v32  ;;  %v1399_v46 = vpack.c.bf16 %v163_v36, %v161_v35  ;;  %v341_v31 = vadd.s32 128, %v340_v28  ;;  %v1631_v33 = vmov 1.0  }
   0xb   :  { %v168_v43 = vld [vmem:[%s2109_s3 + $0x78] sm:$0xff]  ;;  %v41_v44 = vld [vmem:[%s2111_s5 + $0x48] sm:$0xff]  ;;  %1440 = vmatpush1.bf16.msra.mxu1 %v1771_v37  ;;  %v165_v47 = vld [vmem:[%s2109_s3 + $0x60] sm:$0xff]  ;;  %v1799_v48 = vpack.c.bf16 %v38_v42, %v36_v41  ;;  %v62_v41 = vsub.s32 0, %v61_v16 }
   0xc   :  { %1335 = vmatmul.mubr.msk.f32.vlgmr.msra.gmra.mrb[0].mxu0 %vm70_vm0, %v49_v20  ;;  %v43_v45 = vld [vmem:[%s2111_s5 + $0x58] sm:$0xff]  ;;  %1442 = vmatprep.subr.bf16.mxu1 %v1776_v40  ;;  %v1401_v49 = vpack.c.bf16 %v168_v43, %v166_v39  ;;  %v167_v50 = vld [vmem:[%s2109_s3 + $0x70] sm:$0xff]  ;;  %v40_v52 = vld [vmem:[%s2111_s5 + $0x40] sm:$0xff]  ;;  %vm343_vm2 = vcmp.lt.s32.totalorder %v341_v31, 192 }
   0xd   :  { %1392 = vmatpush1.bf16.msra.mxu0 %v1391_v21  ;;  %258 = vmatprep.mubr.f32.mxu0 %v1630_v3  ;;  %v1804_v51 = vpack.c.bf16 %v43_v45, %v41_v44  ;;  %v42_v53 = vld [vmem:[%s2111_s5 + $0x50] sm:$0xff]  ;;  %v45_v54 = vld [vmem:[%s2111_s5 + $0x68] sm:$0xff]  ;;  %v47_v55 = vld [vmem:[%s2111_s5 + $0x78] sm:$0xff]  ;;  %v1403_v56 = vpack.c.bf16 %v167_v50, %v165_v47  ;;  %v1927_v36 = vsel %vm343_vm2, 0.5, %v1630_v3 }
   0xe   :  { %1394 = vmatprep.subr.bf16.mxu0 %v1393_v25  ;;  %v1820_v57 = vpack.c.bf16 %v42_v53, %v40_v52  ;;  %v1822_v58 = vpack.c.bf16 %v47_v55, %v45_v54  ;;  %v44_v59 = vld [vmem:[%s2111_s5 + $0x60] sm:$0xff]  ;;  %v46_v60 = vld [vmem:[%s2111_s5 + $0x70] sm:$0xff]  ;;  %v146_v63 = vld [vmem:[%s2112_s0 + $0x8] sm:$0xff] }
   0xf   :  { %1444 = vmatpush1.bf16.msra.mxu1 %v1799_v48  ;;  %v145_v61 = vld [vmem:[%s2112_s0] sm:$0xff]  ;;  %v1835_v62 = vpack.c.bf16 %v46_v60, %v44_v59  ;;  %v147_v0 = vld [vmem:[%s2112_s0 + $0x10] sm:$0xff]  ;;  %v148_v1 = vld [vmem:[%s2112_s0 + $0x18] sm:$0xff] }
  0x10   :  { %1446 = vmatprep.subr.bf16.mxu1 %v1804_v51  ;;  %v149_v2 = vld [vmem:[%s2112_s0 + $0x20] sm:$0xff]  ;;  %v150_v4 = vld [vmem:[%s2112_s0 + $0x28] sm:$0xff]  ;;  %v151_v5 = vld [vmem:[%s2112_s0 + $0x30] sm:$0xff] }
  0x11   :  { %1396 = vmatpush1.bf16.msra.mxu0 %v1395_v34  ;;  %v152_v6 = vld [vmem:[%s2112_s0 + $0x38] sm:$0xff]  ;;  %v58_v21 = vld [vmem:[%s2113_s6] sm:$0x3]  ;;  %v1924_v34 = vsel %vm343_vm2, 0.5, %v1631_v33  ;;  %s1632_s6 = smov 64  }
  0x12   :  { %1398 = vmatprep.subr.bf16.mxu0 %v1397_v38  ;;  %v67_v23 = vrot.slane %v58_v21, %v66_v19  ;;  %v63_v42 = vrot.slane %v58_v21, %v62_v41 }
  0x13   :  { %1448 = vmatpush1.bf16.msra.mxu1 %v1820_v57 }
  0x14   :  { %1450 = vmatprep.subr.bf16.mxu1 %v1822_v58 }
  0x15   :  { %1400 = vmatpush1.bf16.msra.mxu0 %v1399_v46 }
  0x16   :  { %1402 = vmatprep.subr.bf16.mxu0 %v1401_v49 }
  0x17   :  { %1452 = vmatpush1.bf16.msra.mxu1 %v1835_v62 }
  0x18   :  { %1454 = vmatprep.subr.bf16.mxu1 %v1759_v32 }
  0x19   :  { %1404 = vmatpush1.bf16.msra.mxu0 %v1403_v56  ;;  %v1941_v56 = vld [vmem:[%s2114_s2] sm:$0xff] }
  0x1a   :  { %1406 = vmatprep.subr.bf16.mxu0 %v1759_v32  ;;  %vm449_vm3 = vcmp.gt.s32.totalorder %v1941_v56, 0  ;;  %vm562_vm4 = vcmp.gt.s32.totalorder %v1941_v56, 1  ;;  %vm675_vm5 = vcmp.gt.s32.totalorder %v1941_v56, 2  ;;  %vm788_vm6 = vcmp.gt.s32.totalorder %v1941_v56, 3 }
  0x1b   :  { %vm901_vm7 = vcmp.gt.s32.totalorder %v1941_v56, 4  ;;  %vm1014_vm8 = vcmp.gt.s32.totalorder %v1941_v56, 5  ;;  %vm1127_vm9 = vcmp.gt.s32.totalorder %v1941_v56, 6  ;;  %vm1240_vm11 = vcmp.gt.s32.totalorder %v1941_v56, 7 }
  0x1c   :  { %1336 = vmatmul.mubr.msk.f32.vlgmr.msra.gmra.mrb[2].mxu0 %vm169_vm1, %v145_v61 }
  0x1d   :  { %1408 = vmatpush1.bf16.msra.mxu0 %v1771_v37  ;;  %264 = vmatprep.mubr.f32.mxu0 %v1630_v3 }
  0x1e   :  { %1410 = vmatprep.subr.bf16.mxu0 %v1776_v40 }
  0x20   :  { %1337 = vmatmul.mubr.msk.f32.gmra.mrb[4].mxu0 %vm169_vm1, %v146_v63 }
  0x21   :  { %270 = vmatprep.mubr.f32.mxu0 %v1630_v3  ;;  %1412 = vmatpush1.bf16.msra.mxu0 %v1799_v48 }
  0x22   :  { %1414 = vmatprep.subr.bf16.mxu0 %v1804_v51 }
  0x24   :  { %1338 = vmatmul.mubr.msk.f32.gmra.mrb[6].mxu0 %vm169_vm1, %v147_v0 }
  0x25   :  { %276 = vmatprep.mubr.f32.mxu0 %v1630_v3  ;;  %1416 = vmatpush1.bf16.msra.mxu0 %v1820_v57 }
  0x26   :  { %1418 = vmatprep.subr.bf16.mxu0 %v1822_v58 }
  0x28   :  { %1339 = vmatmul.mubr.msk.f32.gmra.mrb[8].mxu0 %vm169_vm1, %v148_v1 }
  0x29   :  { %282 = vmatprep.mubr.f32.mxu0 %v1630_v3  ;;  %1420 = vmatpush1.bf16.msra.mxu0 %v1835_v62 }
  0x2a   :  { %1422 = vmatprep.subr.bf16.mxu0 %v1759_v32 }
  0x2c   :  { %1340 = vmatmul.mubr.msk.f32.gmra.mrb[10].mxu0 %vm169_vm1, %v149_v2 }
  0x2d   :  { %288 = vmatprep.mubr.f32.mxu0 %v1630_v3 }
  0x30   :  { %1341 = vmatmul.mubr.msk.f32.gmra.mrb[12].mxu0 %vm169_vm1, %v150_v4 }
  0x31   :  { %294 = vmatprep.mubr.f32.mxu0 %v1630_v3 }
  0x34   :  { %1342 = vmatmul.mubr.msk.f32.gmra.mrb[14].mxu0 %vm169_vm1, %v151_v5 }
  0x35   :  { %300 = vmatprep.mubr.f32.mxu0 %v1630_v3 }
  0x38   :  { %1343 = vmatmul.mubr.msk.f32.gmra.mrb[16].mxu0 %vm169_vm1, %v152_v6 }
  0x39   :  { %417 = vmatprep.mubr.f32.mxu0 %v1630_v3 }
  0x3c   :  { %418 = vmatmul.mubr.f32.vlgmr.msra.gmra.mrb[2].mxu0 %v1630_v3 }
  0x3d   :  { %1424 = vmatpush1.bf16.msra.mxu0 %v1771_v37  ;;  %526 = vmatprep.mubr.f32.mxu0 %v1630_v3 }
  0x3e   :  { %1426 = vmatprep.subr.bf16.mxu0 %v1776_v40 }
  0x41   :  { %1428 = vmatpush1.bf16.msra.mxu0 %v1799_v48 }
  0x42   :  { %1430 = vmatprep.subr.bf16.mxu0 %v1804_v51 }
  0x45   :  { %1432 = vmatpush1.bf16.msra.mxu0 %v1820_v57 }
  0x46   :  { %1434 = vmatprep.subr.bf16.mxu0 %v1822_v58 }
  0x49   :  { %1436 = vmatpush1.bf16.msra.mxu0 %v1835_v62 }
  0xdf   :  { %v140_v7 = vpop.f32.mrb[0].mxu0 }
  0xe0   :  { %v142_v8 = vpop.f32.mrb[1].mxu0  ;;  %v1932_v43 = vadd.f32 %v140_v7, %v63_v42 }
  0xe1   :  { %v1921_v26 = vadd.f32 %v142_v8, %v67_v23 }
  0xf7   :  { %v1894_v9 = vpop.f32.mrb[6].mxu0 }
  0xf8   :  { %v1896_v10 = vpop.f32.mrb[7].mxu0  ;;  %v311_v42 = vadd.f32 %v1894_v9, %v1932_v43 }
  0xfb   :  { %v1898_v11 = vpop.f32.mrb[8].mxu0 }
  0xfc   :  { %v1900_v12 = vpop.f32.mrb[9].mxu0 }
  0xff   :  { %v1902_v14 = vpop.f32.mrb[10].mxu0 }
 0x100   :  { %v1904_v15 = vpop.f32.mrb[11].mxu0 }
 0x103   :  { %v1906_v17 = vpop.f32.mrb[12].mxu0 }
 0x104   :  { %v1908_v18 = vpop.f32.mrb[13].mxu0 }
 0x107   :  { %v1910_v20 = vpop.f32.mrb[14].mxu0 }
 0x108   :  { %v1915_v22 = vpop.f32.mrb[15].mxu0 }
 0x10b   :  { %v1917_v24 = vpop.f32.mrb[16].mxu0 }
 0x10c   :  { %v1919_v25 = vpop.f32.mrb[17].mxu0 }
 0x10f   :  { %v419_v27 = vpop.f32.mrb[2].mxu0 }
 0x110   :  { %v421_v29 = vpop.f32.mrb[3].mxu0  ;;  %v1545_v44 = vadd.f32 %v419_v27, %v1932_v43 }
 0x111   :  { %v1546_v30 = vadd.f32 %v421_v29, %v1921_v26 }
 0x113   :  { %1582 = vtanh.f32 %v1546_v30 }
 0x114   :  { %1584 = vtanh.f32 %v1545_v44  ;;  %v312_v44 = vadd.f32 %v1896_v10, %v1921_v26 }
 0x11d   :  { %v1583_v35 = vpop.eup %1582 }
 0x11e   :  { %v429_v38 = vmul.f32 %v1583_v35, %v1924_v34  ;;  %v1585_v45 = vpop.eup %1584 }
 0x11f   :  { %v428_v46 = vmul.f32 0.5, %v1585_v45 }
 0x120   :  { %v431_v39 = vadd.f32 %v429_v38, %v1927_v36 }
 0x121   :  { %v430_v47 = vadd.f32 0.5, %v428_v46 }
 0x122   :  { %434 = vrot.lane.b32.xlu0 %v431_v39, %s1632_s6 }
 0x123   :  { %v432_v52 = vmul.f32 0.0, %v430_v47 }
 0x194   :  { %v435_v49 = vpop.permute.xlu0 %434 }
 0x195   :  { %v437_v50 = vmul.f32 %v435_v49, %v430_v47 }
 0x197   :  { %439 = vrot.lane.b32.xlu0 %v437_v50, %s1632_s6 }
 0x209   :  { %v440_v53 = vpop.permute.xlu0 %439 }
 0x20a   :  { %v442_v54 = vadd.f32 %v440_v53, %v432_v52 }
 0x20c   :  { %1586 = vtanh.f32 %v442_v54 }
 0x216   :  { %v1587_v55 = vpop.eup %1586 }
 0x217   :  { %445 = vrot.lane.b32.xlu1 %v1587_v55, %s1632_s6 }
 0x21b   :  { %451 = vrot.lane.b32.xlu1 %v442_v54, %s1632_s6 }
 0x289   :  { %v446_v59 = vpop.permute.xlu1 %445 }
 0x28a   :  { %v448_v60 = vmul.f32 %v446_v59, %v431_v39 }
 0x28c   :  { %v455_v61 = vsel %vm449_vm3, %v448_v60, 0.0 }
 0x28d   :  { %1344 = vmatmul.mubr.msk.f32.vlgmr.msra.gmra.mrb[4].mxu0 %vm169_vm1, %v455_v61  ;;  %v452_v63 = vpop.permute.xlu1 %451 }
 0x28e   :  { %v454_v0 = vsel %vm449_vm3, %v452_v63, 0.0  ;;  %1378 = vmatprep.mubr.msk.f32.mxu0 %vm1634_vm10, %v1630_v3 }
 0x28f   :  { %542 = vrot.lane.b32.xlu1 %v454_v0, %s1632_s6 }
 0x301   :  { %v543_v27 = vpop.permute.xlu1 %542 }
 0x360   :  { %v528_v1 = vpop.f32.mrb[4].mxu0 }
 0x361   :  { %v530_v2 = vpop.f32.mrb[5].mxu0  ;;  %v1547_v8 = vadd.f32 %v528_v1, %v1932_v43 }
 0x362   :  { %v1548_v4 = vadd.f32 %v530_v2, %v1921_v26 }
 0x364   :  { %1588 = vtanh.f32 %v1548_v4 }
 0x365   :  { %1590 = vtanh.f32 %v1547_v8  ;;  %v313_v8 = vadd.f32 %v1898_v11, %v1932_v43 }
 0x36e   :  { %v1589_v5 = vpop.eup %1588 }
 0x36f   :  { %v538_v6 = vmul.f32 %v1589_v5, %v1924_v34  ;;  %v1591_v13 = vpop.eup %1590 }
 0x370   :  { %v537_v16 = vmul.f32 0.5, %v1591_v13  ;;  %v314_v13 = vadd.f32 %v1900_v12, %v1921_v26 }
 0x371   :  { %v540_v7 = vadd.f32 %v538_v6, %v1927_v36 }
 0x372   :  { %v539_v19 = vadd.f32 0.5, %v537_v16 }
 0x373   :  { %547 = vrot.lane.b32.xlu0 %v540_v7, %s1632_s6 }
 0x374   :  { %v545_v28 = vmul.f32 %v543_v27, %v539_v19 }
 0x3e5   :  { %v548_v21 = vpop.permute.xlu0 %547 }
 0x3e6   :  { %v550_v23 = vmul.f32 %v548_v21, %v539_v19 }
 0x3e8   :  { %552 = vrot.lane.b32.xlu0 %v550_v23, %s1632_s6 }
 0x45a   :  { %v553_v29 = vpop.permute.xlu0 %552 }
 0x45b   :  { %v555_v30 = vadd.f32 %v553_v29, %v545_v28 }
 0x45d   :  { %1592 = vtanh.f32 %v555_v30  ;;  %564 = vrot.lane.b32.xlu0 %v555_v30, %s1632_s6 }
 0x467   :  { %v1593_v31 = vpop.eup %1592 }
 0x468   :  { %558 = vrot.lane.b32.xlu1 %v1593_v31, %s1632_s6 }
 0x4cf   :  { %v565_v33 = vpop.permute.xlu0 %564 }
 0x4d0   :  { %v567_v35 = vsel %vm562_vm4, %v565_v33, %v454_v0 }
 0x4d1   :  { %655 = vrot.lane.b32.xlu0 %v567_v35, %s1632_s6 }
 0x4da   :  { %v559_v38 = vpop.permute.xlu1 %558 }
 0x4db   :  { %v561_v39 = vmul.f32 %v559_v38, %v540_v7 }
 0x4dd   :  { %v568_v41 = vsel %vm562_vm4, %v561_v39, %v455_v61 }
 0x4de   :  { %1345 = vmatmul.mubr.msk.f32.vlgmr.msra.gmra.mrb[0].mxu1 %vm169_vm1, %v568_v41 }
 0x4df   :  { %1456 = vmatpush1.bf16.msra.mxu1 %v1771_v37  ;;  %752 = vmatprep.mubr.f32.mxu1 %v1630_v3 }
 0x4e0   :  { %1458 = vmatprep.subr.bf16.mxu1 %v1776_v40 }
 0x4e3   :  { %1460 = vmatpush1.bf16.msra.mxu1 %v1799_v48 }
 0x4e4   :  { %1462 = vmatprep.subr.bf16.mxu1 %v1804_v51 }
 0x4e7   :  { %1464 = vmatpush1.bf16.msra.mxu1 %v1820_v57 }
 0x4e8   :  { %1466 = vmatprep.subr.bf16.mxu1 %v1822_v58 }
 0x4eb   :  { %1468 = vmatpush1.bf16.msra.mxu1 %v1835_v62 }
 0x4ec   :  { %1470 = vmatprep.subr.bf16.mxu1 %v1759_v32 }
 0x543   :  { %v656_v10 = vpop.permute.xlu0 %655 }
 0x5b1   :  { %v641_v45 = vpop.f32.mrb[0].mxu1 }
 0x5b2   :  { %v646_v46 = vadd.f32 %v641_v45, %v311_v42  ;;  %v643_v47 = vpop.f32.mrb[1].mxu1 }
 0x5b3   :  { %v647_v49 = vadd.f32 %v643_v47, %v312_v44 }
 0x5b5   :  { %1594 = vtanh.f32 %v647_v49 }
 0x5b6   :  { %1596 = vtanh.f32 %v646_v46 }
 0x5bf   :  { %v1595_v50 = vpop.eup %1594 }
 0x5c0   :  { %v651_v52 = vmul.f32 %v1595_v50, %v1924_v34  ;;  %v1597_v54 = vpop.eup %1596  ;;  %v315_v50 = vadd.f32 %v1902_v14, %v1932_v43 }
 0x5c1   :  { %v650_v55 = vmul.f32 0.5, %v1597_v54 }
 0x5c2   :  { %v653_v53 = vadd.f32 %v651_v52, %v1927_v36  ;;  %v316_v52 = vadd.f32 %v1904_v15, %v1921_v26 }
 0x5c3   :  { %v652_v59 = vadd.f32 0.5, %v650_v55 }
 0x5c4   :  { %660 = vrot.lane.b32.xlu1 %v653_v53, %s1632_s6 }
 0x5c5   :  { %v658_v61 = vmul.f32 %v656_v10, %v652_v59 }
 0x636   :  { %v661_v9 = vpop.permute.xlu1 %660 }
 0x637   :  { %v663_v60 = vmul.f32 %v661_v9, %v652_v59 }
 0x639   :  { %665 = vrot.lane.b32.xlu1 %v663_v60, %s1632_s6 }
 0x6ab   :  { %v666_v63 = vpop.permute.xlu1 %665 }
 0x6ac   :  { %v668_v0 = vadd.f32 %v666_v63, %v658_v61 }
 0x6ae   :  { %1598 = vtanh.f32 %v668_v0  ;;  %677 = vrot.lane.b32.xlu1 %v668_v0, %s1632_s6 }
 0x6b8   :  { %v1599_v1 = vpop.eup %1598 }
 0x6b9   :  { %671 = vrot.lane.b32.xlu0 %v1599_v1, %s1632_s6 }
 0x720   :  { %v678_v2 = vpop.permute.xlu1 %677 }
 0x721   :  { %v680_v4 = vsel %vm675_vm5, %v678_v2, %v567_v35 }
 0x722   :  { %768 = vrot.lane.b32.xlu1 %v680_v4, %s1632_s6 }
 0x72b   :  { %v672_v5 = vpop.permute.xlu0 %671 }
 0x72c   :  { %v674_v6 = vmul.f32 %v672_v5, %v653_v53 }
 0x72e   :  { %v681_v7 = vsel %vm675_vm5, %v674_v6, %v568_v41 }
 0x72f   :  { %1346 = vmatmul.mubr.msk.f32.vlgmr.msra.gmra.mrb[2].mxu1 %vm169_vm1, %v681_v7 }
 0x730   :  { %1472 = vmatpush1.bf16.msra.mxu1 %v1771_v37  ;;  %865 = vmatprep.mubr.f32.mxu1 %v1630_v3 }
 0x731   :  { %1474 = vmatprep.subr.bf16.mxu1 %v1776_v40 }
 0x734   :  { %1476 = vmatpush1.bf16.msra.mxu1 %v1799_v48 }
 0x735   :  { %1478 = vmatprep.subr.bf16.mxu1 %v1804_v51 }
 0x738   :  { %1480 = vmatpush1.bf16.msra.mxu1 %v1820_v57 }
 0x739   :  { %1482 = vmatprep.subr.bf16.mxu1 %v1822_v58 }
 0x73c   :  { %1484 = vmatpush1.bf16.msra.mxu1 %v1835_v62 }
 0x73d   :  { %1486 = vmatprep.subr.bf16.mxu1 %v1759_v32 }
 0x794   :  { %v769_v12 = vpop.permute.xlu1 %768 }
 0x802   :  { %v754_v16 = vpop.f32.mrb[2].mxu1 }
 0x803   :  { %v759_v19 = vadd.f32 %v754_v16, %v313_v8  ;;  %v756_v21 = vpop.f32.mrb[3].mxu1 }
 0x804   :  { %v760_v23 = vadd.f32 %v756_v21, %v314_v13  ;;  %v317_v21 = vadd.f32 %v1906_v17, %v1932_v43 }
 0x806   :  { %1600 = vtanh.f32 %v760_v23  ;;  %v318_v23 = vadd.f32 %v1908_v18, %v1921_v26 }
 0x807   :  { %1602 = vtanh.f32 %v759_v19 }
 0x810   :  { %v1601_v27 = vpop.eup %1600 }
 0x811   :  { %v764_v28 = vmul.f32 %v1601_v27, %v1924_v34  ;;  %v1603_v30 = vpop.eup %1602 }
 0x812   :  { %v763_v31 = vmul.f32 0.5, %v1603_v30 }
 0x813   :  { %v766_v29 = vadd.f32 %v764_v28, %v1927_v36 }
 0x814   :  { %v765_v33 = vadd.f32 0.5, %v763_v31 }
 0x815   :  { %773 = vrot.lane.b32.xlu0 %v766_v29, %s1632_s6 }
 0x816   :  { %v771_v38 = vmul.f32 %v769_v12, %v765_v33 }
 0x887   :  { %v774_v11 = vpop.permute.xlu0 %773 }
 0x888   :  { %v776_v35 = vmul.f32 %v774_v11, %v765_v33 }
 0x88a   :  { %778 = vrot.lane.b32.xlu0 %v776_v35, %s1632_s6 }
 0x8fc   :  { %v779_v39 = vpop.permute.xlu0 %778 }
 0x8fd   :  { %v781_v41 = vadd.f32 %v779_v39, %v771_v38 }
 0x8ff   :  { %1604 = vtanh.f32 %v781_v41  ;;  %790 = vrot.lane.b32.xlu0 %v781_v41, %s1632_s6 }
 0x909   :  { %v1605_v42 = vpop.eup %1604 }
 0x90a   :  { %784 = vrot.lane.b32.xlu1 %v1605_v42, %s1632_s6 }
 0x971   :  { %v791_v44 = vpop.permute.xlu0 %790 }
 0x972   :  { %v793_v45 = vsel %vm788_vm6, %v791_v44, %v680_v4 }
 0x973   :  { %881 = vrot.lane.b32.xlu0 %v793_v45, %s1632_s6 }
 0x97c   :  { %v785_v46 = vpop.permute.xlu1 %784 }
 0x97d   :  { %v787_v47 = vmul.f32 %v785_v46, %v766_v29 }
 0x97f   :  { %v794_v49 = vsel %vm788_vm6, %v787_v47, %v681_v7 }
 0x980   :  { %1347 = vmatmul.mubr.msk.f32.vlgmr.msra.gmra.mrb[4].mxu1 %vm169_vm1, %v794_v49 }
 0x981   :  { %1488 = vmatpush1.bf16.msra.mxu1 %v1771_v37  ;;  %978 = vmatprep.mubr.f32.mxu1 %v1630_v3 }
 0x982   :  { %1490 = vmatprep.subr.bf16.mxu1 %v1776_v40 }
 0x985   :  { %1492 = vmatpush1.bf16.msra.mxu1 %v1799_v48 }
 0x986   :  { %1494 = vmatprep.subr.bf16.mxu1 %v1804_v51 }
 0x989   :  { %1496 = vmatpush1.bf16.msra.mxu1 %v1820_v57 }
 0x98a   :  { %1498 = vmatprep.subr.bf16.mxu1 %v1822_v58 }
 0x98d   :  { %1500 = vmatpush1.bf16.msra.mxu1 %v1835_v62 }
 0x98e   :  { %1502 = vmatprep.subr.bf16.mxu1 %v1759_v32 }
 0x9e5   :  { %v882_v15 = vpop.permute.xlu0 %881 }
 0xa53   :  { %v867_v53 = vpop.f32.mrb[4].mxu1 }
 0xa54   :  { %v872_v54 = vadd.f32 %v867_v53, %v315_v50  ;;  %v869_v55 = vpop.f32.mrb[5].mxu1 }
 0xa55   :  { %v873_v59 = vadd.f32 %v869_v55, %v316_v52  ;;  %v319_v52 = vadd.f32 %v1910_v20, %v1932_v43 }
 0xa57   :  { %1606 = vtanh.f32 %v873_v59 }
 0xa58   :  { %1608 = vtanh.f32 %v872_v54 }
 0xa61   :  { %v1607_v9 = vpop.eup %1606 }
 0xa62   :  { %v877_v60 = vmul.f32 %v1607_v9, %v1924_v34  ;;  %v1609_v61 = vpop.eup %1608 }
 0xa63   :  { %v876_v63 = vmul.f32 0.5, %v1609_v61 }
 0xa64   :  { %v879_v10 = vadd.f32 %v877_v60, %v1927_v36 }
 0xa65   :  { %v878_v0 = vadd.f32 0.5, %v876_v63 }
 0xa66   :  { %886 = vrot.lane.b32.xlu1 %v879_v10, %s1632_s6 }
 0xa67   :  { %v884_v2 = vmul.f32 %v882_v15, %v878_v0 }
 0xad8   :  { %v887_v14 = vpop.permute.xlu1 %886 }
 0xad9   :  { %v889_v1 = vmul.f32 %v887_v14, %v878_v0 }
 0xadb   :  { %891 = vrot.lane.b32.xlu1 %v889_v1, %s1632_s6 }
 0xb4d   :  { %v892_v4 = vpop.permute.xlu1 %891 }
 0xb4e   :  { %v894_v5 = vadd.f32 %v892_v4, %v884_v2  ;;  %v321_v4 = vadd.f32 %v1917_v24, %v1932_v43 }
 0xb50   :  { %1610 = vtanh.f32 %v894_v5  ;;  %903 = vrot.lane.b32.xlu1 %v894_v5, %s1632_s6  ;;  %v322_v5 = vadd.f32 %v1919_v25, %v1921_v26  ;;  %v1633_v25 = vmov 0.0|0.0  }
 0xb51   :  { %1533 = vmatprep.subr.bf16.mxu0 %v1633_v25 }
 0xb5a   :  { %v1611_v6 = vpop.eup %1610 }
 0xb5b   :  { %897 = vrot.lane.b32.xlu0 %v1611_v6, %s1632_s6 }
 0xbc2   :  { %v904_v7 = vpop.permute.xlu1 %903 }
 0xbc3   :  { %v906_v8 = vsel %vm901_vm7, %v904_v7, %v793_v45 }
 0xbc4   :  { %994 = vrot.lane.b32.xlu1 %v906_v8, %s1632_s6 }
 0xbcd   :  { %v898_v13 = vpop.permute.xlu0 %897 }
 0xbce   :  { %v900_v16 = vmul.f32 %v898_v13, %v879_v10 }
 0xbd0   :  { %v907_v19 = vsel %vm901_vm7, %v900_v16, %v794_v49 }
 0xbd1   :  { %1348 = vmatmul.mubr.msk.f32.vlgmr.msra.gmra.mrb[6].mxu1 %vm169_vm1, %v907_v19 }
 0xbd2   :  { %1504 = vmatpush1.bf16.msra.mxu1 %v1771_v37  ;;  %1091 = vmatprep.mubr.f32.mxu1 %v1630_v3 }
 0xbd3   :  { %1506 = vmatprep.subr.bf16.mxu1 %v1776_v40 }
 0xbd6   :  { %1508 = vmatpush1.bf16.msra.mxu1 %v1799_v48 }
 0xbd7   :  { %1510 = vmatprep.subr.bf16.mxu1 %v1804_v51 }
 0xbda   :  { %1512 = vmatpush1.bf16.msra.mxu1 %v1820_v57 }
 0xbdb   :  { %1514 = vmatprep.subr.bf16.mxu1 %v1822_v58 }
 0xbde   :  { %1516 = vmatpush1.bf16.msra.mxu1 %v1835_v62 }
 0xbdf   :  { %1518 = vmatprep.subr.bf16.mxu1 %v1759_v32 }
 0xc36   :  { %v995_v18 = vpop.permute.xlu1 %994 }
 0xca4   :  { %v980_v27 = vpop.f32.mrb[6].mxu1 }
 0xca5   :  { %v985_v28 = vadd.f32 %v980_v27, %v317_v21  ;;  %v982_v29 = vpop.f32.mrb[7].mxu1 }
 0xca6   :  { %v986_v30 = vadd.f32 %v982_v29, %v318_v23 }
 0xca8   :  { %1612 = vtanh.f32 %v986_v30  ;;  %v1245_v30 = vld [vmem:[%s2115_s7 + $0x18] sm:$0xff] }
 0xca9   :  { %1614 = vtanh.f32 %v985_v28 }
 0xcb2   :  { %v1613_v31 = vpop.eup %1612 }
 0xcb3   :  { %v990_v33 = vmul.f32 %v1613_v31, %v1924_v34  ;;  %v1615_v32 = vpop.eup %1614 }
 0xcb4   :  { %v989_v35 = vmul.f32 0.5, %v1615_v32 }
 0xcb5   :  { %v992_v11 = vadd.f32 %v990_v33, %v1927_v36  ;;  %v1246_v33 = vld [vmem:[%s2115_s7 + $0x20] sm:$0xff] }
 0xcb6   :  { %v991_v12 = vadd.f32 0.5, %v989_v35 }
 0xcb7   :  { %999 = vrot.lane.b32.xlu0 %v992_v11, %s1632_s6 }
 0xcb8   :  { %v997_v39 = vmul.f32 %v995_v18, %v991_v12 }
 0xd29   :  { %v1000_v17 = vpop.permute.xlu0 %999 }
 0xd2a   :  { %v1002_v38 = vmul.f32 %v1000_v17, %v991_v12  ;;  %v1248_v12 = vld [vmem:[%s2115_s7 + $0x30] sm:$0xff]  ;;  %v1249_v17 = vld [vmem:[%s2115_s7 + $0x38] sm:$0xff] }
 0xd2b   :  { %v1543_v18 = vpack.c.bf16 %v1249_v17, %v1248_v12 }
 0xd2c   :  { %1004 = vrot.lane.b32.xlu0 %v1002_v38, %s1632_s6 }
 0xd9e   :  { %v1005_v41 = vpop.permute.xlu0 %1004 }
 0xd9f   :  { %v1007_v42 = vadd.f32 %v1005_v41, %v997_v39 }
 0xda1   :  { %1616 = vtanh.f32 %v1007_v42  ;;  %1016 = vrot.lane.b32.xlu0 %v1007_v42, %s1632_s6 }
 0xdab   :  { %v1617_v44 = vpop.eup %1616 }
 0xdac   :  { %1010 = vrot.lane.b32.xlu1 %v1617_v44, %s1632_s6 }
 0xe13   :  { %v1017_v45 = vpop.permute.xlu0 %1016 }
 0xe14   :  { %v1019_v46 = vsel %vm1014_vm8, %v1017_v45, %v906_v8 }
 0xe15   :  { %1107 = vrot.lane.b32.xlu0 %v1019_v46, %s1632_s6 }
 0xe1e   :  { %v1011_v47 = vpop.permute.xlu1 %1010 }
 0xe1f   :  { %v1013_v49 = vmul.f32 %v1011_v47, %v992_v11  ;;  %v1247_v11 = vld [vmem:[%s2115_s7 + $0x28] sm:$0xff]  ;;  %v1351_v47 = vld [vmem:[%s2116_s8] ss:$0 sm:$0xff] }
 0xe20   :  { %v1540_v32 = vpack.c.bf16 %v1247_v11, %v1246_v33 }
 0xe21   :  { %v1020_v50 = vsel %vm1014_vm8, %v1013_v49, %v907_v19 }
 0xe22   :  { %1349 = vmatmul.mubr.msk.f32.vlgmr.msra.gmra.mrb[8].mxu1 %vm169_vm1, %v1020_v50 }
 0xe23   :  { %1520 = vmatpush1.bf16.msra.mxu1 %v1771_v37  ;;  %1204 = vmatprep.mubr.f32.mxu1 %v1630_v3  ;;  %v320_v37 = vadd.f32 %v1915_v22, %v1921_v26  ;;  %v1242_v26 = vld [vmem:[%s2115_s7] sm:$0xff] }
 0xe24   :  { %1522 = vmatprep.subr.bf16.mxu1 %v1776_v40 }
 0xe27   :  { %1524 = vmatpush1.bf16.msra.mxu1 %v1799_v48 }
 0xe28   :  { %1526 = vmatprep.subr.bf16.mxu1 %v1804_v51 }
 0xe2b   :  { %1528 = vmatpush1.bf16.msra.mxu1 %v1820_v57 }
 0xe2c   :  { %1530 = vmatprep.subr.bf16.mxu1 %v1822_v58 }
 0xe2f   :  { %1532 = vmatpush1.bf16.msra.mxu1 %v1835_v62 }
 0xe87   :  { %v1108_v22 = vpop.permute.xlu0 %1107 }
 0xef5   :  { %v1093_v53 = vpop.f32.mrb[8].mxu1 }
 0xef6   :  { %v1098_v54 = vadd.f32 %v1093_v53, %v319_v52  ;;  %v1095_v55 = vpop.f32.mrb[9].mxu1 }
 0xef7   :  { %v1099_v40 = vadd.f32 %v1095_v55, %v320_v37 }
 0xef9   :  { %1618 = vtanh.f32 %v1099_v40 }
 0xefa   :  { %1620 = vtanh.f32 %v1098_v54 }
 0xf03   :  { %v1619_v48 = vpop.eup %1618 }
 0xf04   :  { %v1103_v51 = vmul.f32 %v1619_v48, %v1924_v34  ;;  %v1621_v58 = vpop.eup %1620 }
 0xf05   :  { %v1102_v62 = vmul.f32 0.5, %v1621_v58 }
 0xf06   :  { %v1105_v57 = vadd.f32 %v1103_v51, %v1927_v36 }
 0xf07   :  { %v1104_v59 = vadd.f32 0.5, %v1102_v62 }
 0xf08   :  { %1112 = vrot.lane.b32.xlu1 %v1105_v57, %s1632_s6 }
 0xf09   :  { %v1110_v60 = vmul.f32 %v1108_v22, %v1104_v59 }
 0xf7a   :  { %v1113_v20 = vpop.permute.xlu1 %1112 }
 0xf7b   :  { %v1115_v9 = vmul.f32 %v1113_v20, %v1104_v59 }
 0xf7d   :  { %1117 = vrot.lane.b32.xlu1 %v1115_v9, %s1632_s6 }
 0xfef   :  { %v1118_v10 = vpop.permute.xlu1 %1117 }
 0xff0   :  { %v1120_v61 = vadd.f32 %v1118_v10, %v1110_v60 }
 0xff2   :  { %1622 = vtanh.f32 %v1120_v61  ;;  %1129 = vrot.lane.b32.xlu1 %v1120_v61, %s1632_s6 }
 0xffc   :  { %v1623_v63 = vpop.eup %1622 }
 0xffd   :  { %1123 = vrot.lane.b32.xlu0 %v1623_v63, %s1632_s6 }
0x1064   :  { %v1130_v0 = vpop.permute.xlu1 %1129 }
0x1065   :  { %v1132_v14 = vsel %vm1127_vm9, %v1130_v0, %v1019_v46 }
0x1066   :  { %1220 = vrot.lane.b32.xlu1 %v1132_v14, %s1632_s6 }
0x106f   :  { %v1124_v1 = vpop.permute.xlu0 %1123 }
0x1070   :  { %v1126_v15 = vmul.f32 %v1124_v1, %v1105_v57 }
0x1072   :  { %v1133_v2 = vsel %vm1127_vm9, %v1126_v15, %v1020_v50 }
0x1073   :  { %1350 = vmatmul.mubr.msk.f32.vlgmr.msra.gmra.mrb[10].mxu1 %vm169_vm1, %v1133_v2 }
0x10d8   :  { %v1221_v35 = vpop.permute.xlu1 %1220 }
0x1146   :  { %v1206_v6 = vpop.f32.mrb[10].mxu1 }
0x1147   :  { %v1211_v7 = vadd.f32 %v1206_v6, %v321_v4  ;;  %v1208_v8 = vpop.f32.mrb[11].mxu1 }
0x1148   :  { %v1212_v13 = vadd.f32 %v1208_v8, %v322_v5 }
0x114a   :  { %1624 = vtanh.f32 %v1212_v13 }
0x114b   :  { %1626 = vtanh.f32 %v1211_v7 }
0x1154   :  { %v1625_v16 = vpop.eup %1624 }
0x1155   :  { %v1216_v19 = vmul.f32 %v1625_v16, %v1924_v34  ;;  %v1627_v23 = vpop.eup %1626  ;;  %v1243_v34 = vld [vmem:[%s2115_s7 + $0x8] sm:$0xff] }
0x1156   :  { %v1215_v27 = vmul.f32 0.5, %v1627_v23  ;;  %v1534_v29 = vpack.c.bf16 %v1243_v34, %v1242_v26 }
0x1157   :  { %v1218_v21 = vadd.f32 %v1216_v19, %v1927_v36  ;;  %v1244_v36 = vld [vmem:[%s2115_s7 + $0x10] sm:$0xff] }
0x1158   :  { %v1217_v28 = vadd.f32 0.5, %v1215_v27  ;;  %1535 = vmatpush3.bf16.msra.mxu0 %v1534_v29  ;;  %v1537_v31 = vpack.c.bf16 %v1245_v30, %v1244_v36 }
0x1159   :  { %1225 = vrot.lane.b32.xlu0 %v1218_v21, %s1632_s6  ;;  %1536 = vmatprep.subr.bf16.mxu0 %v1633_v25 }
0x115a   :  { %v1223_v38 = vmul.f32 %v1221_v35, %v1217_v28 }
0x115c   :  { %1538 = vmatpush3.bf16.msra.mxu0 %v1537_v31 }
0x115d   :  { %1539 = vmatprep.subr.bf16.mxu0 %v1633_v25 }
0x1160   :  { %1541 = vmatpush3.bf16.msra.mxu0 %v1540_v32 }
0x1161   :  { %1542 = vmatprep.subr.bf16.mxu0 %v1633_v25 }
0x1164   :  { %1544 = vmatpush3.bf16.msra.mxu0 %v1543_v18 }
0x11cb   :  { %v1226_v24 = vpop.permute.xlu0 %1225 }
0x11cc   :  { %v1228_v43 = vmul.f32 %v1226_v24, %v1217_v28 }
0x11ce   :  { %1230 = vrot.lane.b32.xlu0 %v1228_v43, %s1632_s6 }
0x1240   :  { %v1231_v39 = vpop.permute.xlu0 %1230 }
0x1241   :  { %v1233_v41 = vadd.f32 %v1231_v39, %v1223_v38 }
0x1243   :  { %1628 = vtanh.f32 %v1233_v41 }
0x124d   :  { %v1629_v42 = vpop.eup %1628 }
0x124e   :  { %1236 = vrot.lane.b32.xlu1 %v1629_v42, %s1632_s6 }
0x12c0   :  { %v1237_v44 = vpop.permute.xlu1 %1236 }
0x12c1   :  { %v1239_v45 = vmul.f32 %v1237_v44, %v1218_v21 }
0x12c3   :  { %v1241_v46 = vsel %vm1240_vm11, %v1239_v45, %v1133_v2 }
0x12c4   :  { %1379 = vmatmul.mubr.msk.f32.vlgmr.msra.gmra.mrb[18].mxu0 %vm169_vm1, %v1241_v46 }
0x1397   :  { %v1326_v49 = vpop.f32.mrb[18].mxu0 }
0x1398   :  { %v1327_v50 = vadd.f32 %v1351_v47, %v1326_v49  ;;  %v1380_v52 = vpop.f32.mrb[19].mxu0 }
0x139a   :  { %1330 = vst [vmem:[%s2117_s9] sm:$0xff] %v1327_v50 }

</bundles_post_ra>
